<compile_context>
chip_gen: v6e
topology: v6e:2x2x1
jax: 0.10.0
libtpu: 0.0.40
codegen_flags: <defaults>
</compile_context>

<pallas_src>
import functools
import math

import jax
import jax.numpy as jnp
from jax import lax
from jax.experimental import pallas as pl
from jax.experimental.pallas import tpu as pltpu


def _round_up(x, m):
    return (x + m - 1) // m * m


def _token_exchange_kernel(x0_ref, x1_ref, m_ref, o0_ref, o1_ref, *, thr, k, C):
    x0 = x0_ref[...]                       # (tm, k*C)
    x1 = x1_ref[...]                       # (tm, k*C)
    m = m_ref[...]                         # (tm, 2k)  [m0 tokens | m1 tokens]

    if k == 1:
        keep0 = m[:, 0:1] >= thr           # (tm, 1) -> broadcast over lanes
        keep1 = m[:, 1:2] >= thr
    else:
        W = k * C
        # Per-token keep decision, then expand each token's bit across its C
        # lanes with a one-hot "expander" matmul:  (tm, 2k) @ (2k, 2W).
        keep_tok = (m >= thr).astype(jnp.float32)                    # (tm, 2k)
        g = lax.broadcasted_iota(jnp.int32, (2 * k, 2 * W), 0)
        l = lax.broadcasted_iota(jnp.int32, (2 * k, 2 * W), 1)
        g_lo = g * C
        expand = jnp.logical_and(l >= g_lo, l < g_lo + C).astype(jnp.float32)
        kexp = jnp.dot(keep_tok, expand,
                       preferred_element_type=jnp.float32)           # (tm, 2W)
        keep0 = kexp[:, :W] > 0.5
        keep1 = kexp[:, W:] > 0.5

    o0_ref[...] = jnp.where(keep0, x0, x1)
    o1_ref[...] = jnp.where(keep1, x1, x0)


def token_exchange(x0, x1, m0, m1, mask_threshold):
    """x0, x1: (B, N, C) token tensors; m0, m1: (B, N) masks. Returns [y0, y1]."""
    B, N, C = x0.shape
    M = B * N
    itemsize = jnp.dtype(x0.dtype).itemsize
    m_itemsize = jnp.dtype(m0.dtype).itemsize

    # ---- Lane folding: pack k consecutive tokens into one 128-multiple row.
    if C % 128 == 0:
        k = 1
    else:
        k = 128 // math.gcd(C, 128)
        if k > 16:
            # Awkward channel count (few factors of 2): fall back to the
            # un-folded layout and accept masked partial stores.
            k = 1
    W = k * C

    # ---- Row tile: ~1 MiB of x per tile, multiple of the sublane packing.
    pack = max(32 // itemsize, 32 // m_itemsize)       # 8 f32 / 16 bf16 / 32 i8
    target_tile_bytes = 1 << 20
    tm = max(pack, (target_tile_bytes // max(1, W * itemsize)) // pack * pack)
    rows_needed = -(-M // k)                           # ceil(M / k)
    tm = min(tm, _round_up(rows_needed, pack))
    rows = _round_up(rows_needed, tm)
    Mpad = rows * k

    # ---- Wrapper-side flatten / pad / fold.
    def flat_x(x):
        xf = x.reshape(M, C)
        if Mpad != M:
            xf = jnp.pad(xf, ((0, Mpad - M), (0, 0)))
        return xf.reshape(rows, W)

    def flat_m(m):
        mf = m.reshape(M)
        if Mpad != M:
            mf = jnp.pad(mf, (0, Mpad - M))
        return mf.reshape(rows, k)

    x0f, x1f = flat_x(x0), flat_x(x1)
    mf = jnp.concatenate([flat_m(m0), flat_m(m1)], axis=1)      # (rows, 2k)

    kernel = functools.partial(_token_exchange_kernel,
                               thr=float(mask_threshold), k=k, C=C)

    tok_spec = pl.BlockSpec((tm, W), lambda i: (i, 0))
    msk_spec = pl.BlockSpec((tm, 2 * k), lambda i: (i, 0))

    bytes_accessed = 4 * rows * W * itemsize + rows * 2 * k * m_itemsize
    out0, out1 = pl.pallas_call(
        kernel,
        out_shape=(jax.ShapeDtypeStruct((rows, W), x0.dtype),
                   jax.ShapeDtypeStruct((rows, W), x1.dtype)),
        grid=(rows // tm,),
        in_specs=[tok_spec, tok_spec, msk_spec],
        out_specs=(tok_spec, tok_spec),
        compiler_params=pltpu.CompilerParams(
            dimension_semantics=("parallel",),
            vmem_limit_bytes=32 * 1024 * 1024),
        cost_estimate=pl.CostEstimate(flops=2 * rows * W,
                                      transcendentals=0,
                                      bytes_accessed=bytes_accessed),
    )(x0f, x1f, mf)

    def unflat(o):
        return o.reshape(Mpad, C)[:M].reshape(B, N, C)

    return [unflat(out0), unflat(out1)]


if __name__ == "__main__":
    key = jax.random.PRNGKey(0)
    k0, k1, k2, k3 = jax.random.split(key, 4)

    B, N, C = 2, 16, 32
    x0 = jax.random.normal(k0, (B, N, C), dtype=jnp.float32)
    x1 = jax.random.normal(k1, (B, N, C), dtype=jnp.float32)
    m0 = jax.random.uniform(k2, (B, N), dtype=jnp.float32)
    m1 = jax.random.uniform(k3, (B, N), dtype=jnp.float32)
    thr = 0.5

    out0, out1 = token_exchange(x0, x1, m0, m1, thr)
    jax.block_until_ready(out0)
    jax.block_until_ready(out1)

    # Reference (pure JAX, mirrors the PyTorch boolean-index semantics).
    ref0 = jnp.where((m0 >= thr)[..., None], x0, x1)
    ref1 = jnp.where((m1 >= thr)[..., None], x1, x0)
    assert jnp.allclose(out0, ref0) and jnp.allclose(out1, ref1)

    print("KERNEL_OK")
</pallas_src>

<mosaic_0001>
module attributes {stable_mosaic.version = 11 : i64} {
  func.func @_token_exchange_kernel(%arg0: i32, %arg1: memref<8x128xf32, #tpu.memory_space<vmem>>, %arg2: memref<8x128xf32, #tpu.memory_space<vmem>>, %arg3: memref<8x8xf32, #tpu.memory_space<vmem>>, %arg4: memref<8x128xf32, #tpu.memory_space<vmem>>, %arg5: memref<8x128xf32, #tpu.memory_space<vmem>>) attributes {dimension_semantics = [#tpu.dimension_semantics<parallel>], iteration_bounds = array<i64: 1>, scalar_prefetch = 0 : i64, scratch_operands = 0 : i64, tpu.core_type = #tpu.core_type<tc>, window_params = [{transform_indices = @transform_0, window_bounds = array<i64: 8, 128>}, {transform_indices = @transform_1, window_bounds = array<i64: 8, 128>}, {transform_indices = @transform_2, window_bounds = array<i64: 8, 8>}, {transform_indices = @transform_3, window_bounds = array<i64: 8, 128>}, {transform_indices = @transform_4, window_bounds = array<i64: 8, 128>}]} {
    %c0 = arith.constant 0 : index
    %c0_0 = arith.constant 0 : index
    %0 = vector.load %arg1[%c0, %c0_0] : memref<8x128xf32, #tpu.memory_space<vmem>>, vector<8x128xf32>
    %c0_1 = arith.constant 0 : index
    %c0_2 = arith.constant 0 : index
    %1 = vector.load %arg2[%c0_1, %c0_2] : memref<8x128xf32, #tpu.memory_space<vmem>>, vector<8x128xf32>
    %c0_3 = arith.constant 0 : index
    %c0_4 = arith.constant 0 : index
    %2 = vector.load %arg3[%c0_3, %c0_4] : memref<8x8xf32, #tpu.memory_space<vmem>>, vector<8x8xf32>
    %cst = arith.constant 5.000000e-01 : f32
    %3 = vector.broadcast %cst : f32 to vector<8x8xf32>
    %4 = arith.cmpf oge, %2, %3 : vector<8x8xf32>
    %5 = arith.extui %4 : vector<8x8xi1> to vector<8x8xi32>
    %6 = arith.sitofp %5 : vector<8x8xi32> to vector<8x8xf32>
    %7 = tpu.iota {dimensions = array<i32: 0>} : vector<8x256xi32>
    %8 = tpu.iota {dimensions = array<i32: 1>} : vector<8x256xi32>
    %c32_i32 = arith.constant 32 : i32
    %9 = vector.broadcast %c32_i32 : i32 to vector<8x256xi32>
    %10 = arith.muli %7, %9 : vector<8x256xi32>
    %11 = arith.cmpi sge, %8, %10 : vector<8x256xi32>
    %c32_i32_5 = arith.constant 32 : i32
    %12 = vector.broadcast %c32_i32_5 : i32 to vector<8x256xi32>
    %13 = arith.addi %10, %12 : vector<8x256xi32>
    %14 = arith.cmpi slt, %8, %13 : vector<8x256xi32>
    %15 = arith.andi %11, %14 : vector<8x256xi1>
    %16 = arith.extui %15 : vector<8x256xi1> to vector<8x256xi32>
    %17 = arith.sitofp %16 : vector<8x256xi32> to vector<8x256xf32>
    %cst_6 = arith.constant dense<0.000000e+00> : vector<8x256xf32>
    %18 = tpu.matmul %6, %17, %cst_6 {dimension_numbers = #tpu.dot_dimension_numbers<[1], [0], [0], [1], [0, 0, 1, 1], [], []>} : vector<8x8xf32>, vector<8x256xf32>, vector<8x256xf32> -> vector<8x256xf32>
    %19 = vector.extract_strided_slice %18 {offsets = [0, 0], sizes = [8, 128], strides = [1, 1]} : vector<8x256xf32> to vector<8x128xf32>
    %cst_7 = arith.constant 5.000000e-01 : f32
    %20 = vector.broadcast %cst_7 : f32 to vector<8x128xf32>
    %21 = arith.cmpf ogt, %19, %20 : vector<8x128xf32>
    %22 = vector.extract_strided_slice %18 {offsets = [0, 128], sizes = [8, 128], strides = [1, 1]} : vector<8x256xf32> to vector<8x128xf32>
    %cst_8 = arith.constant 5.000000e-01 : f32
    %23 = vector.broadcast %cst_8 : f32 to vector<8x128xf32>
    %24 = arith.cmpf ogt, %22, %23 : vector<8x128xf32>
    %25 = arith.select %21, %0, %1 : vector<8x128xi1>, vector<8x128xf32>
    %c0_9 = arith.constant 0 : index
    %c0_10 = arith.constant 0 : index
    %26 = vector.load %arg4[%c0_9, %c0_10] : memref<8x128xf32, #tpu.memory_space<vmem>>, vector<8x128xf32>
    tpu.vector_store %arg4[%c0_9, %c0_10], %25 {strides = array<i32>} : memref<8x128xf32, #tpu.memory_space<vmem>>, vector<8x128xf32>,
    %27 = arith.select %24, %1, %0 : vector<8x128xi1>, vector<8x128xf32>
    %c0_11 = arith.constant 0 : index
    %c0_12 = arith.constant 0 : index
    %28 = vector.load %arg5[%c0_11, %c0_12] : memref<8x128xf32, #tpu.memory_space<vmem>>, vector<8x128xf32>
    tpu.vector_store %arg5[%c0_11, %c0_12], %27 {strides = array<i32>} : memref<8x128xf32, #tpu.memory_space<vmem>>, vector<8x128xf32>,
    return
  }
  func.func @transform_0(%arg0: i32) -> (i32, i32) {
    %c0_i32 = arith.constant 0 : i32
    %c0_i32_0 = arith.constant 0 : i32
    return %arg0, %c0_i32 : i32, i32
  }
  func.func @transform_1(%arg0: i32) -> (i32, i32) {
    %c0_i32 = arith.constant 0 : i32
    %c0_i32_0 = arith.constant 0 : i32
    return %arg0, %c0_i32 : i32, i32
  }
  func.func @transform_2(%arg0: i32) -> (i32, i32) {
    %c0_i32 = arith.constant 0 : i32
    %c0_i32_0 = arith.constant 0 : i32
    return %arg0, %c0_i32 : i32, i32
  }
  func.func @transform_3(%arg0: i32) -> (i32, i32) {
    %c0_i32 = arith.constant 0 : i32
    %c0_i32_0 = arith.constant 0 : i32
    return %arg0, %c0_i32 : i32, i32
  }
  func.func @transform_4(%arg0: i32) -> (i32, i32) {
    %c0_i32 = arith.constant 0 : i32
    %c0_i32_0 = arith.constant 0 : i32
    return %arg0, %c0_i32 : i32, i32
  }
}

</mosaic_0001>

<bundles_post_ra>
// kernel: tpu_custom_call.1
= control target key start
LH: loop header
LB: loop body
LE: loop exit
PB: predicated region body
PF: predicated region fallthrough
CT: control target
= control target key end

     0   :  { %10 = vsyncpa [#allocation3], 0  ;;  %s355_s0 = inlined_call_operand.hbm [shape: f32[8,128], index: 0, kind: input, shape index: {}]   ;;  %s356_s1 = inlined_call_operand.hbm [shape: f32[8,128], index: 1, kind: input, shape index: {}]   ;;  %s357_s2 = inlined_call_operand.hbm [shape: f32[8,8], index: 2, kind: input, shape index: {}]   ;;  %s358_s3 = inlined_call_operand.hbm [shape: f32[8,128], index: 3, kind: output, shape index: {0}]   ;;  %s359_s4 = inlined_call_operand.hbm [shape: f32[8,128], index: 4, kind: output, shape index: {1}]  }
   0x1   :  { %11 = vsyncpa [#allocation6], 0 }
   0x2   :  { %12 = vsyncpa [#allocation4], 0 }
   0x3   :  { %13 = vsyncpa [#allocation10], 0  ;;  %s308_s15 = smov [#allocation5]   ;;  %s309_s17 = smov [#allocation2]  }
   0x4   :  { %s30_s16 = sshll.u32 %s308_s15, 4  ;;  %s20_s18 = sshll.u32 %s309_s17, 4  ;;  %s31_s16 = int_to_ptr.vmem [resolvable:$true] %s30_s16  ;;  %s21_s18 = int_to_ptr.vmem [resolvable:$true] %s20_s18 }
   0x5   :  { %s208_s19 = scalar_lea.vmem %s31_s16, 128  ;;  %p213_p1 = scmp.lt.s32.totalorder %s31_s16, %s31_s16 }
   0x6   :  { %p209_p0 = scmp.ne.s32.totalorder %s31_s16, %s208_s19  ;;  %p214_p2 = scmp.lt.s32.totalorder %s208_s19, %s208_s19 }
   0x8   :  { %p215_p3 = por %p214_p2, %p213_p1 }
   0xa   :  { %p216_p4 = pnand %p215_p3, %p209_p0 }
   0xc   :  { %219 = shalt.err (!%p216_p4)
}
   0xd   :  { %33 = dma.hbm_to_vmem [thread:$0]  %s356_s1, 128, %s31_s16, [#allocation6]  }
   0xe   :  { %s228_s22 = scalar_lea.vmem %s21_s18, 128  ;;  %p233_p6 = scmp.lt.s32.totalorder %s21_s18, %s21_s18 }
   0xf   :  { %p229_p5 = scmp.ne.s32.totalorder %s21_s18, %s228_s22  ;;  %p234_p7 = scmp.lt.s32.totalorder %s228_s22, %s228_s22 }
  0x11   :  { %p235_p8 = por %p234_p7, %p233_p6 }
  0x13   :  { %p236_p9 = pnand %p235_p8, %p229_p5 }
  0x15   :  { %239 = shalt.err (!%p236_p9)
}
  0x16   :  { %23 = dma.hbm_to_vmem [thread:$0]  %s355_s0, 128, %s21_s18, [#allocation3]  }
  0x17   :  { %s310_s25 = smov [#allocation7]  }
  0x18   :  { %s40_s26 = sshll.u32 %s310_s25, 4  ;;  %s41_s26 = int_to_ptr.vmem [resolvable:$true] %s40_s26 }
  0x19   :  { %s248_s27 = scalar_lea.vmem %s41_s26, 128  ;;  %p253_p11 = scmp.lt.s32.totalorder %s41_s26, %s41_s26 }
  0x1a   :  { %p249_p10 = scmp.ne.s32.totalorder %s41_s26, %s248_s27  ;;  %p254_p12 = scmp.lt.s32.totalorder %s248_s27, %s248_s27 }
  0x1c   :  { %p255_p13 = por %p254_p12, %p253_p11 }
  0x1e   :  { %p256_p0 = pnand %p255_p13, %p249_p10 }
  0x20   :  { %259 = shalt.err (!%p256_p0)
}
  0x21   :  { %43 = dma.hbm_to_vmem [thread:$0]  %s357_s2, 128, %s41_s26, [#allocation6]  }
  0x22   :  { %300 = dma.done.wait [#allocation3], 128  }
  0x23   :  { %301 = vsyncadd [#allocation3], 4294967168 }
  0x24   :  { %302 = dma.done.wait [#allocation6], 256  }
  0x25   :  { %303 = vsyncadd [#allocation6], 4294967040  ;;  %v59_v0 = vlaneseq  ;;  %v311_v1 = vmov 0.0   ;;  %v55_v7 = vld [vmem:[#allocation7] sm:$0xff]  ;;  %vm76_vm6 = vcmask 64512   ;;  %v312_v9 = vmov 1.0  }
  0x26   :  { %144 = vmatprep.mubr.f32.mxu0 %v311_v1  ;;  %vm56_vm4 = vcmp.ge.f32.partialorder %v55_v7, 0.5  ;;  %s313_s0 = smov [#allocation8]   ;;  %v53_v10 = vld [vmem:[#allocation2] sm:$0xff]  ;;  %v54_v11 = vld [vmem:[#allocation5] sm:$0xff]  ;;  %s314_s29 = smov [#allocation9]  }
  0x27   :  { %v60_v2 = vshrl.u32 %v59_v0, 7  ;;  %v62_v3 = vand.u32 127, %v59_v0  ;;  %v187_v8 = vsel %vm56_vm4, 1.0, %v311_v1  ;;  %s163_s2 = sshll.u32 %s313_s0, 4  ;;  %s173_s30 = sshll.u32 %s314_s29, 4  ;;  %s164_s2 = int_to_ptr.vmem [resolvable:$true] %s163_s2  ;;  %s174_s30 = int_to_ptr.vmem [resolvable:$true] %s173_s30 }
  0x28   :  { %s260_s5 = scalar_lea.vmem %s164_s2, 128  ;;  %p265_p2 = scmp.lt.s32.totalorder %s164_s2, %s164_s2 }
  0x29   :  { %v63_v4 = vadd.s32 128, %v62_v3  ;;  %v64_v5 = vmul.u32 32, %v60_v2  ;;  %p261_p1 = scmp.ne.s32.totalorder %s164_s2, %s260_s5  ;;  %p266_p3 = scmp.lt.s32.totalorder %s260_s5, %s260_s5 }
  0x2b   :  { %vm66_vm0 = vcmp.ge.s32.totalorder %v63_v4, %v64_v5  ;;  %v67_v6 = vadd.s32 32, %v64_v5  ;;  %vm65_vm1 = vcmp.ge.s32.totalorder %v62_v3, %v64_v5  ;;  %p267_p4 = por %p266_p3, %p265_p2 }
  0x2d   :  { %vm69_vm2 = vcmp.lt.s32.totalorder %v63_v4, %v67_v6  ;;  %vm68_vm3 = vcmp.lt.s32.totalorder %v62_v3, %v67_v6  ;;  %p268_p5 = pnand %p267_p4, %p261_p1 }
  0x2e   :  { %vm71_vm5 = vmand %vm66_vm0, %vm69_vm2 }
  0x2f   :  { %190 = vmatprep.subr.msk.mxu0 %vm71_vm5, %v312_v9  ;;  %vm70_vm7 = vmand %vm65_vm1, %vm68_vm3 }
  0x30   :  { %191 = vmatpush1.msk.msra.mxu0 %vm70_vm7, %v312_v9 }
  0x31   :  { %192 = vmatmul.mubr.msk.f32.vlgmr.msra.gmra.mxu0 %vm76_vm6, %v187_v8 }
  0xf1   :  { %v146_v12 = vpop.f32.mrf.mxu0 }
  0xf2   :  { %vm151_vm8 = vcmp.gt.f32.partialorder %v146_v12, 0.5 }
  0xf3   :  { %v148_v13 = vpop.f32.mrf.mxu0  ;;  %v153_v14 = vsel %vm151_vm8, %v53_v10, %v54_v11 }
  0xf4   :  { %vm152_vm9 = vcmp.gt.f32.partialorder %v148_v13, 0.5  ;;  %154 = vst [vmem:[#allocation8] sm:$0xff] %v153_v14 }
  0xf5   :  { %v155_v15 = vsel %vm152_vm9, %v54_v11, %v53_v10 }
  0xf6   :  { %271 = shalt.err (!%p268_p5)
}
  0xf7   :  { %166 = dma.vmem_to_hbm [thread:$0]  %s164_s2, 128, %s358_s3, [#allocation4]   ;;  %156 = vst [vmem:[#allocation9] sm:$0xff] %v155_v15 }
  0xf8   :  { %s280_s8 = scalar_lea.vmem %s174_s30, 128  ;;  %p285_p7 = scmp.lt.s32.totalorder %s174_s30, %s174_s30 }
  0xf9   :  { %p281_p6 = scmp.ne.s32.totalorder %s174_s30, %s280_s8  ;;  %p286_p8 = scmp.lt.s32.totalorder %s280_s8, %s280_s8 }
  0xfb   :  { %p287_p9 = por %p286_p8, %p285_p7 }
  0xfd   :  { %p288_p10 = pnand %p287_p9, %p281_p6 }
  0xff   :  { %291 = shalt.err (!%p288_p10)
}
 0x100   :  { %176 = dma.vmem_to_hbm [thread:$0]  %s174_s30, 128, %s359_s4, [#allocation10]  }
 0x101   :  { %304 = dma.done.wait [#allocation4], 128  }
 0x102   :  { %305 = vsyncadd [#allocation4], 4294967168 }
 0x103   :  { %306 = dma.done.wait [#allocation10], 128  }
 0x104   :  { %307 = vsyncadd [#allocation10], 4294967168 }
 0x105   :  { %183 = vsyncpa [#allocation3], 1 }
 0x106   :  { %184 = vsyncpa [#allocation6], 1 }
 0x107   :  { %185 = vsyncpa [#allocation4], 1 }
 0x108   :  { %186 = vsyncpa [#allocation10], 1 }

</bundles_post_ra>
